<compile_context>
chip_gen: v5e
topology: v5e:2x2
jax: 0.10.0
libtpu: 0.0.40
codegen_flags: <defaults>
</compile_context>

<pallas_src>
import jax
import jax.numpy as jnp
from jax.experimental import pallas as pl
from jax.experimental.pallas import tpu as pltpu


def _round_up(x, m):
    return ((x + m - 1) // m) * m


def _pick_tile(n):
    for t in (512, 256, 128):
        if n >= t:
            return t
    return 128


# ----------------------------------------------------------------------------
# Stage 1: feature transform  H = X @ W   (bf16 in / bf16 out, f32 accumulate)
# ----------------------------------------------------------------------------
def _xform_kernel(x_ref, w_ref, h_ref):
    h_ref[...] = jnp.dot(
        x_ref[...], w_ref[...], preferred_element_type=jnp.float32
    ).astype(h_ref.dtype)


def feature_transform(x_p, w_p, *, tm):
    n_p, fin_p = x_p.shape
    fout_p = w_p.shape[1]
    return pl.pallas_call(
        _xform_kernel,
        out_shape=jax.ShapeDtypeStruct((n_p, fout_p), jnp.bfloat16),
        grid=(n_p // tm,),
        in_specs=[
            pl.BlockSpec((tm, fin_p), lambda i: (i, 0)),
            pl.BlockSpec((fin_p, fout_p), lambda i: (0, 0)),
        ],
        out_specs=pl.BlockSpec((tm, fout_p), lambda i: (i, 0)),
        compiler_params=pltpu.CompilerParams(
            dimension_semantics=("parallel",)),
        cost_estimate=pl.CostEstimate(
            flops=2 * n_p * fin_p * fout_p,
            transcendentals=0,
            bytes_accessed=(n_p * fin_p + fin_p * fout_p + n_p * fout_p) * 2),
    )(x_p, w_p)


# ----------------------------------------------------------------------------
# Stage 2: aggregation  Y = relu(A_hat @ H + b) [* dropout_mask]
# Output-stationary K tiling with f32 VMEM accumulator; epilogue at k == last.
# ----------------------------------------------------------------------------
def _agg_kernel(a_ref, h_ref, b_ref, o_ref, acc_ref):
    k = pl.program_id(1)

    @pl.when(k == 0)
    def _():
        acc_ref[...] = jnp.zeros_like(acc_ref)

    acc_ref[...] += jnp.dot(a_ref[...], h_ref[...],
                            preferred_element_type=jnp.float32)

    @pl.when(k == pl.num_programs(1) - 1)
    def _():
        o_ref[...] = jnp.maximum(acc_ref[...] + b_ref[...],
                                 0.0).astype(o_ref.dtype)


def _agg_dropout_kernel(a_ref, h_ref, b_ref, m_ref, o_ref, acc_ref):
    k = pl.program_id(1)

    @pl.when(k == 0)
    def _():
        acc_ref[...] = jnp.zeros_like(acc_ref)

    acc_ref[...] += jnp.dot(a_ref[...], h_ref[...],
                            preferred_element_type=jnp.float32)

    @pl.when(k == pl.num_programs(1) - 1)
    def _():
        y = jnp.maximum(acc_ref[...] + b_ref[...], 0.0)
        o_ref[...] = (y * m_ref[...]).astype(o_ref.dtype)


def aggregate(a_p, h_p, b_p, dropout_mask=None, *, tm, tk):
    n_p = a_p.shape[0]
    fout_p = h_p.shape[1]
    in_specs = [
        pl.BlockSpec((tm, tk), lambda i, k: (i, k)),      # A_hat tile
        pl.BlockSpec((tk, fout_p), lambda i, k: (k, 0)),  # H K-slab
        pl.BlockSpec((1, fout_p), lambda i, k: (0, 0)),   # bias (epilogue only)
    ]
    args = [a_p, h_p, b_p]
    kernel = _agg_kernel
    if dropout_mask is not None:
        in_specs.append(pl.BlockSpec((tm, fout_p), lambda i, k: (i, 0)))
        args.append(dropout_mask)
        kernel = _agg_dropout_kernel

    # VMEM budget: double-buffered bf16 A/H tiles + f32 out blocks + f32 acc,
    # plus headroom; stays well inside v7x's 64 MiB physical VMEM.
    need = (2 * tm * tk * 2 + 2 * tk * fout_p * 2
            + 2 * tm * fout_p * 4 + tm * fout_p * 4)
    vmem_limit = int(min(max(2 * need, 16 * 1024 * 1024), 48 * 1024 * 1024))

    return pl.pallas_call(
        kernel,
        out_shape=jax.ShapeDtypeStruct((n_p, fout_p), jnp.float32),
        grid=(n_p // tm, n_p // tk),
        in_specs=in_specs,
        out_specs=pl.BlockSpec((tm, fout_p), lambda i, k: (i, 0)),
        scratch_shapes=[pltpu.VMEM((tm, fout_p), jnp.float32)],
        compiler_params=pltpu.CompilerParams(
            dimension_semantics=("parallel", "arbitrary"),
            vmem_limit_bytes=vmem_limit),
        cost_estimate=pl.CostEstimate(
            flops=2 * n_p * n_p * fout_p,
            transcendentals=0,
            bytes_accessed=n_p * n_p * 2 + n_p * fout_p * (2 + 4)),
    )(*args)


def gcn_layer(a_p, x_p, w, b, *, tm, tk, dropout_mask=None):
    """One GCNConv + ReLU (+ fused inverted dropout) over padded inputs."""
    fin, fout = w.shape
    fin_p = x_p.shape[1]
    fout_p = _round_up(fout, 128)
    w_p = jnp.zeros((fin_p, fout_p), jnp.bfloat16).at[:fin, :fout].set(
        w.astype(jnp.bfloat16))
    b_p = jnp.zeros((1, fout_p), jnp.float32).at[:, :fout].set(b)
    h = feature_transform(x_p, w_p, tm=tm)                      # [Np, FoutP] bf16
    return aggregate(a_p, h, b_p, dropout_mask, tm=tm, tk=tk)   # [Np, FoutP] f32


# ----------------------------------------------------------------------------
# Glue: GCN normalization (dense A_hat) and parameter setup
# ----------------------------------------------------------------------------
def gcn_norm_dense(edge_index, edge_weight, num_nodes):
    src = edge_index[0]
    dst = edge_index[1]
    if edge_weight is None:
        edge_weight = jnp.ones(src.shape[0], dtype=jnp.float32)
    # add self-loops with weight 1 (GCNConv default: add_self_loops=True, fill=1)
    loop = jnp.arange(num_nodes, dtype=src.dtype)
    src = jnp.concatenate([src, loop])
    dst = jnp.concatenate([dst, loop])
    ew = jnp.concatenate([edge_weight.astype(jnp.float32),
                          jnp.ones(num_nodes, dtype=jnp.float32)])
    deg = jnp.zeros((num_nodes,), jnp.float32).at[dst].add(ew)
    dinv = jnp.where(deg > 0, 1.0 / jnp.sqrt(deg), 0.0)
    norm = dinv[src] * ew * dinv[dst]
    a_hat = jnp.zeros((num_nodes, num_nodes), jnp.float32).at[dst, src].add(norm)
    return a_hat


def glorot(key, fan_in, fan_out):
    limit = jnp.sqrt(6.0 / (fan_in + fan_out))
    return jax.random.uniform(key, (fan_in, fan_out), jnp.float32, -limit, limit)


class GCNPallas:
    """Mirror of the PyTorch GCN module (stack of GCNConv layers)."""

    def __init__(self, in_channels, hidden, out_channels, graph_layer, dropout, key):
        self.dropout = float(dropout)
        self.graph_layer = int(graph_layer)
        dims = ([(in_channels, out_channels)] if graph_layer == 1 else
                [(in_channels, hidden)] +
                [(hidden, hidden)] * (graph_layer - 2) +
                [(hidden, out_channels)])
        self.params = []
        for (fin, fout) in dims:
            key, wk = jax.random.split(key)
            w = glorot(wk, fin, fout)
            b = jnp.zeros((1, fout), jnp.float32)  # GCNConv bias init: zeros
            self.params.append((w, b))

    def __call__(self, x, edge_index, edge_weight=None, *, rng_key=None):
        n, fin = x.shape
        tile = _pick_tile(n)
        n_p = _round_up(n, tile)
        fin_p = _round_up(fin, 128)

        # densify + normalize the adjacency once per forward; bf16, zero-padded
        a_hat = gcn_norm_dense(edge_index, edge_weight, n)
        a_p = jnp.zeros((n_p, n_p), jnp.bfloat16).at[:n, :n].set(
            a_hat.astype(jnp.bfloat16))
        h = jnp.zeros((n_p, fin_p), jnp.bfloat16).at[:n, :fin].set(
            x.astype(jnp.bfloat16))

        if rng_key is None:
            rng_key = jax.random.PRNGKey(0)

        # hidden layers: GCNConv -> ReLU -> dropout (fused in the epilogue)
        for i, (w, b) in enumerate(self.params[:-1]):
            fout_p = _round_up(w.shape[1], 128)
            mask = None
            if self.dropout > 0.0:
                keep = jax.random.bernoulli(
                    jax.random.fold_in(rng_key, i),
                    1.0 - self.dropout, (n_p, fout_p))
                mask = keep.astype(jnp.float32) / (1.0 - self.dropout)
            y = gcn_layer(a_p, h, w, b, tm=tile, tk=tile, dropout_mask=mask)
            h = y.astype(jnp.bfloat16)

        # last layer: GCNConv -> ReLU (no dropout)
        w, b = self.params[-1]
        y = gcn_layer(a_p, h, w, b, tm=tile, tk=tile, dropout_mask=None)
        return y[:n, :w.shape[1]]


# ----------------------------------------------------------------------------
if __name__ == "__main__":
    key = jax.random.PRNGKey(0)

    num_nodes = 16
    in_channels = 4
    hidden = 32
    out_channels = 8
    graph_layer = 2
    dropout = 0.5
    num_edges = 32

    key, kx, ke, kw, kp, kd = jax.random.split(key, 6)
    x = jax.random.normal(kx, (num_nodes, in_channels), jnp.float32)
    edge_index = jax.random.randint(ke, (2, num_edges), 0, num_nodes, jnp.int32)
    edge_weight = jax.random.uniform(kw, (num_edges,), jnp.float32, 0.1, 1.0)

    model = GCNPallas(in_channels, hidden, out_channels, graph_layer, dropout, kp)
    out = model(x, edge_index, edge_weight, rng_key=kd)
    out = jax.block_until_ready(out)

    assert out.shape == (num_nodes, out_channels)
    assert bool(jnp.all(out >= 0.0))  # final ReLU
    print("KERNEL_OK")
</pallas_src>

<mosaic_0001>
module attributes {stable_mosaic.version = 11 : i64} {
  func.func @_xform_kernel(%arg0: i32, %arg1: memref<128x128xbf16, #tpu.memory_space<vmem>>, %arg2: memref<128x128xbf16, #tpu.memory_space<vmem>>, %arg3: memref<128x128xbf16, #tpu.memory_space<vmem>>) attributes {dimension_semantics = [#tpu.dimension_semantics<parallel>], iteration_bounds = array<i64: 1>, scalar_prefetch = 0 : i64, scratch_operands = 0 : i64, tpu.core_type = #tpu.core_type<tc>, window_params = [{transform_indices = @transform_0, window_bounds = array<i64: 128, 128>}, {pipeline_mode = #tpu.pipeline_mode<synchronous>, transform_indices = @transform_1, window_bounds = array<i64: 128, 128>}, {transform_indices = @transform_2, window_bounds = array<i64: 128, 128>}]} {
    %c0 = arith.constant 0 : index
    %c0_0 = arith.constant 0 : index
    %0 = vector.load %arg1[%c0, %c0_0] : memref<128x128xbf16, #tpu.memory_space<vmem>>, vector<128x128xbf16>
    %c0_1 = arith.constant 0 : index
    %c0_2 = arith.constant 0 : index
    %1 = vector.load %arg2[%c0_1, %c0_2] : memref<128x128xbf16, #tpu.memory_space<vmem>>, vector<128x128xbf16>
    %cst = arith.constant dense<0.000000e+00> : vector<128x128xf32>
    %2 = tpu.matmul %0, %1, %cst {dimension_numbers = #tpu.dot_dimension_numbers<[1], [0], [0], [1], [0, 0, 1, 1], [], []>} : vector<128x128xbf16>, vector<128x128xbf16>, vector<128x128xf32> -> vector<128x128xf32>
    %3 = arith.truncf %2 : vector<128x128xf32> to vector<128x128xbf16>
    %c0_3 = arith.constant 0 : index
    %c0_4 = arith.constant 0 : index
    %4 = vector.load %arg3[%c0_3, %c0_4] : memref<128x128xbf16, #tpu.memory_space<vmem>>, vector<128x128xbf16>
    tpu.vector_store %arg3[%c0_3, %c0_4], %3 {strides = array<i32>} : memref<128x128xbf16, #tpu.memory_space<vmem>>, vector<128x128xbf16>,
    return
  }
  func.func @transform_0(%arg0: i32) -> (i32, i32) {
    %c0_i32 = arith.constant 0 : i32
    %c0_i32_0 = arith.constant 0 : i32
    return %arg0, %c0_i32 : i32, i32
  }
  func.func @transform_1(%arg0: i32) -> (i32, i32) {
    %c0_i32 = arith.constant 0 : i32
    %c0_i32_0 = arith.constant 0 : i32
    %c0_i32_1 = arith.constant 0 : i32
    return %c0_i32, %c0_i32_0 : i32, i32
  }
  func.func @transform_2(%arg0: i32) -> (i32, i32) {
    %c0_i32 = arith.constant 0 : i32
    %c0_i32_0 = arith.constant 0 : i32
    return %arg0, %c0_i32 : i32, i32
  }
}

</mosaic_0001>

<bundles_post_ra>
// kernel: tpu_custom_call.1
= control target key start
LH: loop header
LB: loop body
LE: loop exit
PB: predicated region body
PF: predicated region fallthrough
CT: control target
= control target key end

     0   :  { %7 = vsyncpa [#allocation3], 0  ;;  %s545_s0 = inlined_call_operand.hbm [shape: bf16[128,128], index: 0, kind: input, shape index: {}]   ;;  %s546_s1 = inlined_call_operand.hbm [shape: bf16[128,128], index: 1, kind: input, shape index: {}]   ;;  %s547_s2 = inlined_call_operand.hbm [shape: bf16[128,128], index: 2, kind: output, shape index: {}]  }
   0x1   :  { %8 = vsyncpa [#allocation6], 0 }
   0x2   :  { %9 = vsyncpa [#allocation4], 0  ;;  %s14_s11 = sshll.u32 %s545_s0, 4  ;;  %s507_s12 = smov [#allocation2]   ;;  %s15_s11 = int_to_ptr.hbm [resolvable:$true] %s14_s11 }
   0x3   :  { %s16_s13 = sshll.u32 %s507_s12, 4  ;;  %s27_s16 = sshll.u32 %s546_s1, 4  ;;  %s17_s13 = int_to_ptr.vmem [resolvable:$true] %s16_s13  ;;  %s28_s16 = int_to_ptr.hbm [resolvable:$true] %s27_s16 }
   0x4   :  { %s508_s17 = smov 64   ;;  %s509_s18 = smov 4  }
   0x5   :  { %22 = dma.hbm_to_vmem [thread:$0]  %s15_s11, 1024, %s17_s13, [#allocation3], %s508_s17, %s508_s17, %s509_s18  }
   0x6   :  { %s510_s19 = smov [#allocation5]  }
   0x7   :  { %s29_s20 = sshll.u32 %s510_s19, 4  ;;  %s30_s20 = int_to_ptr.vmem [resolvable:$true] %s29_s20 }
   0x8   :  { %35 = dma.hbm_to_vmem [thread:$0]  %s28_s16, 1024, %s30_s20, [#allocation6], %s508_s17, %s508_s17, %s509_s18  }
   0x9   :  { %501 = dma.done.wait [#allocation3], 1024  }
   0xa   :  { %502 = vsyncadd [#allocation3], 4294966272 }
   0xb   :  { %503 = dma.done.wait [#allocation6], 1024  }
   0xc   :  { %504 = vsyncadd [#allocation6], 4294966272  ;;  %v352_v0 = vld [vmem:[#allocation5 + $0x38] sm:$0xff]  ;;  %v351_v1 = vld [vmem:[#allocation5 + $0x30] sm:$0xff]  ;;  %s511_s0 = smov [#allocation7]   ;;  %s259_s23 = sshll.u32 %s547_s2, 4  ;;  %s260_s23 = int_to_ptr.hbm [resolvable:$true] %s259_s23 }
   0xd   :  { %172 = vmatpush.bf16.msra.mxu0 %v352_v0  ;;  %400 = vmatpush.bf16.msra.mxu1 %v352_v0  ;;  %v350_v2 = vld [vmem:[#allocation5 + $0x28] sm:$0xff]  ;;  %v349_v3 = vld [vmem:[#allocation5 + $0x20] sm:$0xff]  ;;  %v348_v4 = vld [vmem:[#allocation5 + $0x18] sm:$0xff]  ;;  %s257_s1 = sshll.u32 %s511_s0, 4  ;;  %s258_s1 = int_to_ptr.vmem [resolvable:$true] %s257_s1 }
   0xe   :  { %401 = vmatpush.bf16.msra.mxu2 %v352_v0  ;;  %402 = vmatpush.bf16.msra.mxu3 %v352_v0  ;;  %v347_v5 = vld [vmem:[#allocation5 + $0x10] sm:$0xff]  ;;  %v346_v6 = vld [vmem:[#allocation5 + $0x8] sm:$0xff]  ;;  %v345_v7 = vld [vmem:[#allocation5] sm:$0xff] }
   0xf   :  { %v337_v8 = vld [vmem:[#allocation2] sm:$0xff]  ;;  %v339_v9 = vld [vmem:[#allocation2 + $0x10] sm:$0xff]  ;;  %v338_v12 = vld [vmem:[#allocation2 + $0x8] sm:$0xff] }
  0x10   :  { %v341_v10 = vld [vmem:[#allocation2 + $0x20] sm:$0xff]  ;;  %v343_v11 = vld [vmem:[#allocation2 + $0x30] sm:$0xff]  ;;  %v340_v13 = vld [vmem:[#allocation2 + $0x18] sm:$0xff] }
  0x11   :  { %173 = vmatpush.bf16.msra.mxu0 %v351_v1  ;;  %403 = vmatpush.bf16.msra.mxu1 %v351_v1  ;;  %v342_v14 = vld [vmem:[#allocation2 + $0x28] sm:$0xff]  ;;  %v344_v15 = vld [vmem:[#allocation2 + $0x38] sm:$0xff] }
  0x12   :  { %404 = vmatpush.bf16.msra.mxu2 %v351_v1  ;;  %405 = vmatpush.bf16.msra.mxu3 %v351_v1 }
  0x15   :  { %174 = vmatpush.bf16.msra.mxu0 %v350_v2  ;;  %406 = vmatpush.bf16.msra.mxu1 %v350_v2 }
  0x16   :  { %407 = vmatpush.bf16.msra.mxu2 %v350_v2  ;;  %408 = vmatpush.bf16.msra.mxu3 %v350_v2 }
  0x19   :  { %175 = vmatpush.bf16.msra.mxu0 %v349_v3  ;;  %409 = vmatpush.bf16.msra.mxu1 %v349_v3 }
  0x1a   :  { %410 = vmatpush.bf16.msra.mxu2 %v349_v3  ;;  %411 = vmatpush.bf16.msra.mxu3 %v349_v3 }
  0x1d   :  { %176 = vmatpush.bf16.msra.mxu0 %v348_v4  ;;  %412 = vmatpush.bf16.msra.mxu1 %v348_v4 }
  0x1e   :  { %413 = vmatpush.bf16.msra.mxu2 %v348_v4  ;;  %414 = vmatpush.bf16.msra.mxu3 %v348_v4 }
  0x21   :  { %177 = vmatpush.bf16.msra.mxu0 %v347_v5  ;;  %415 = vmatpush.bf16.msra.mxu1 %v347_v5 }
  0x22   :  { %416 = vmatpush.bf16.msra.mxu2 %v347_v5  ;;  %417 = vmatpush.bf16.msra.mxu3 %v347_v5 }
  0x25   :  { %178 = vmatpush.bf16.msra.mxu0 %v346_v6  ;;  %418 = vmatpush.bf16.msra.mxu1 %v346_v6 }
  0x26   :  { %419 = vmatpush.bf16.msra.mxu2 %v346_v6  ;;  %420 = vmatpush.bf16.msra.mxu3 %v346_v6 }
  0x29   :  { %179 = vmatpush.bf16.msra.mxu0 %v345_v7  ;;  %421 = vmatpush.bf16.msra.mxu1 %v345_v7 }
  0x2a   :  { %422 = vmatpush.bf16.msra.mxu2 %v345_v7  ;;  %423 = vmatpush.bf16.msra.mxu3 %v345_v7 }
  0x2c   :  { %180 = vmatmul.bf16.vlgmr.msra.gmra.mxu0 %v337_v8  ;;  %190 = vmatmul.bf16.vlgmr.msra.gmra.mxu1 %v339_v9 }
  0x2d   :  { %200 = vmatmul.bf16.vlgmr.msra.gmra.mxu2 %v341_v10  ;;  %210 = vmatmul.bf16.vlgmr.msra.gmra.mxu3 %v343_v11 }
  0x3c   :  { %185 = vmatmul.bf16.gmra.mxu0 %v338_v12  ;;  %195 = vmatmul.bf16.gmra.mxu1 %v340_v13 }
  0x3d   :  { %205 = vmatmul.bf16.gmra.mxu2 %v342_v14  ;;  %215 = vmatmul.bf16.gmra.mxu3 %v344_v15 }
  0xa9   :  { %v181_v16 = vpop.f32.mrf.mxu0  ;;  %v191_v17 = vpop.f32.mrf.mxu1 }
  0xb0   :  { %v201_v18 = vpop.f32.mrf.mxu2  ;;  %v211_v19 = vpop.f32.mrf.mxu3 }
  0xb1   :  { %v183_v20 = vpop.f32.mrf.mxu0  ;;  %v193_v21 = vpop.f32.mrf.mxu1 }
  0xb2   :  { %v356_v22 = vpack.c.bf16 %v183_v20, %v181_v16  ;;  %v366_v23 = vpack.c.bf16 %v193_v21, %v191_v17 }
  0xb4   :  { %357 = vst [vmem:[#allocation7] sm:$0xff] %v356_v22  }
  0xb5   :  { %394 = vst [vmem:[#allocation7 + $0x10] sm:$0xff] %v366_v23  }
  0xb8   :  { %v203_v24 = vpop.f32.mrf.mxu2  ;;  %v213_v25 = vpop.f32.mrf.mxu3 }
  0xb9   :  { %v376_v26 = vpack.c.bf16 %v203_v24, %v201_v18  ;;  %v386_v27 = vpack.c.bf16 %v213_v25, %v211_v19  ;;  %v186_v28 = vpop.f32.mrf.mxu0  ;;  %v196_v29 = vpop.f32.mrf.mxu1 }
  0xbb   :  { %396 = vst [vmem:[#allocation7 + $0x20] sm:$0xff] %v376_v26  }
  0xbc   :  { %398 = vst [vmem:[#allocation7 + $0x30] sm:$0xff] %v386_v27  }
  0xc0   :  { %v206_v30 = vpop.f32.mrf.mxu2  ;;  %v216_v31 = vpop.f32.mrf.mxu3 }
  0xc1   :  { %v188_v32 = vpop.f32.mrf.mxu0  ;;  %v198_v33 = vpop.f32.mrf.mxu1 }
  0xc2   :  { %v361_v34 = vpack.c.bf16 %v188_v32, %v186_v28  ;;  %v371_v35 = vpack.c.bf16 %v198_v33, %v196_v29 }
  0xc4   :  { %393 = vst [vmem:[#allocation7 + $0x8] sm:$0xff] %v361_v34  }
  0xc5   :  { %395 = vst [vmem:[#allocation7 + $0x18] sm:$0xff] %v371_v35  }
  0xc8   :  { %v208_v36 = vpop.f32.mrf.mxu2  ;;  %v218_v37 = vpop.f32.mrf.mxu3 }
  0xc9   :  { %v381_v38 = vpack.c.bf16 %v208_v36, %v206_v30  ;;  %v391_v39 = vpack.c.bf16 %v218_v37, %v216_v31 }
  0xcb   :  { %397 = vst [vmem:[#allocation7 + $0x28] sm:$0xff] %v381_v38  }
  0xcc   :  { %399 = vst [vmem:[#allocation7 + $0x38] sm:$0xff] %v391_v39  }
  0xcd   :  { %265 = dma.vmem_to_hbm [thread:$0]  %s258_s1, 1024, %s260_s23, [#allocation4], %s508_s17, %s508_s17, %s509_s18  }
  0xce   :  { %505 = dma.done.wait [#allocation4], 1024  }
  0xcf   :  { %506 = vsyncadd [#allocation4], 4294966272 }
  0xd0   :  { %270 = vsyncpa [#allocation3], 1 }
  0xd1   :  { %271 = vsyncpa [#allocation6], 1 }
  0xd2   :  { %272 = vsyncpa [#allocation4], 1 }

</bundles_post_ra>
